<compile_context>
chip_gen: v7x
topology: tpu7x:2x2x1
jax: 0.10.0
libtpu: 0.0.40
codegen_flags: <defaults>
</compile_context>

<pallas_src>
import math

import jax
import jax.numpy as jnp
from jax.experimental import pallas as pl
from jax.experimental.pallas import tpu as pltpu


def _largest_divisor_leq(n, k):
    k = max(1, min(n, int(k)))
    while n % k:
        k -= 1
    return k


def bert_self_attention(hidden_states, params, n_heads, *,
                        heads_per_block=4, batch_tile=4):
    """hidden_states: (B, S, D). params: dict of (D, D) weights / (D,) biases.

    Weight dtype sets the MXU operand dtype (pass bf16 weights for bf16 matmuls
    with f32 accumulation); softmax math is always f32.
    heads_per_block: 4 is a good default for v6e/v7x, 2 for v5e.
    """
    B, S, D = hidden_states.shape
    assert D % n_heads == 0
    d_head = D // n_heads
    scale = 1.0 / math.sqrt(d_head)

    hpB = _largest_divisor_leq(n_heads, heads_per_block)
    BT = _largest_divisor_leq(B, batch_tile)
    n_groups = n_heads // hpB
    GW = hpB * d_head                      # lane width of one head-group

    compute_dtype = params["wq"].dtype
    x = hidden_states.astype(compute_dtype)

    # ---- wrapper-side weight packing (one-time, outside the kernel) ----
    def w_groups(w):                       # (D, D) -> (n_groups, D, GW)
        return w.astype(compute_dtype).reshape(D, n_groups, GW).transpose(1, 0, 2)

    def b_groups(b):                       # (D,) -> (n_groups, 1, GW), f32
        return jnp.asarray(b, jnp.float32).reshape(n_groups, 1, GW)

    # Fold the attention scale into the Q projection (zero in-kernel cost).
    wq_scaled = (params["wq"].astype(jnp.float32) * scale).astype(compute_dtype)
    bq_scaled = params["bq"].astype(jnp.float32) * scale

    # Fused QKV weights/biases: columns ordered [Q heads | K heads | V heads].
    wqkv = jnp.concatenate(
        [w_groups(wq_scaled), w_groups(params["wk"]), w_groups(params["wv"])],
        axis=-1)                                            # (n_groups, D, 3*GW)
    bqkv = jnp.concatenate(
        [b_groups(bq_scaled), b_groups(params["bk"]), b_groups(params["bv"])],
        axis=-1)                                            # (n_groups, 1, 3*GW)

    wo = params["wo"].astype(compute_dtype)                 # (D, D), resident
    bo = params["bo"].astype(jnp.float32).reshape(1, D)

    # ---- kernel ----
    def kernel(x_ref, wqkv_ref, bqkv_ref, wo_ref, bo_ref, o_ref, ctx_ref):
        g = pl.program_id(1)
        mxu = wqkv_ref.dtype

        # Fused Q|K|V projection for this head group, batched over the batch
        # tile: (BT*S, D) @ (D, 3*GW), f32 accumulation + f32 biases.
        x2 = x_ref[...].reshape(BT * S, D)
        qkv = jnp.dot(x2, wqkv_ref[0], preferred_element_type=jnp.float32)
        qkv = qkv + bqkv_ref[0]                             # (BT*S, 3*GW) f32

        head_ctx = []
        for h in range(hpB):                                # static unroll
            def head(part, h=h):
                c0 = part * GW + h * d_head                 # static lane offset
                return qkv[:, c0:c0 + d_head].reshape(BT, S, d_head).astype(mxu)
            qh, kh, vh = head(0), head(1), head(2)

            # QK^T (scale already folded into Wq); contract the last dims.
            dots = jnp.einsum('bqd,bkd->bqk', qh, kh,
                              preferred_element_type=jnp.float32)   # (BT, S, S)

            # Unnormalized softmax; normalization deferred to the small
            # (S, d_head) context -> ~S/d_head fewer VPU multiplies per head.
            m = jnp.max(dots, axis=-1, keepdims=True)
            p = jnp.exp(dots - m)
            denom = jnp.sum(p, axis=-1, keepdims=True)      # (BT, S, 1)

            ctx = jnp.einsum('bqk,bkd->bqd', p.astype(mxu), vh,
                             preferred_element_type=jnp.float32)    # (BT, S, d_head)
            ctx = ctx * pl.reciprocal(denom, approx=False)  # exact -> no drift
            head_ctx.append(ctx)

        grp_ctx = jnp.concatenate(head_ctx, axis=-1)        # (BT, S, GW) f32
        grp_ctx = grp_ctx.reshape(BT * S, GW).astype(ctx_ref.dtype)

        # Place this group's context at its lane offset in the lane-dense
        # (BT*S, D) context scratch.  Dispatch on the group id with pl.when so
        # every store uses a STATIC lane slice (no dynamic lane indexing).
        for gg in range(n_groups):
            @pl.when(g == gg)
            def _store(gg=gg):
                ctx_ref[:, gg * GW:(gg + 1) * GW] = grp_ctx

        # One full-contraction-depth output projection once all groups landed.
        @pl.when(g == n_groups - 1)
        def _finalize():
            out = jnp.dot(ctx_ref[...], wo_ref[...],
                          preferred_element_type=jnp.float32) + bo_ref[...]
            o_ref[...] = out.reshape(BT, S, D).astype(o_ref.dtype)

    # ---- specs ----
    x_spec = pl.BlockSpec((BT, S, D), lambda b, g: (b, 0, 0))
    wqkv_spec = pl.BlockSpec((1, D, 3 * GW), lambda b, g: (g, 0, 0))
    bqkv_spec = pl.BlockSpec((1, 1, 3 * GW), lambda b, g: (g, 0, 0))
    wo_spec = pl.BlockSpec((D, D), lambda b, g: (0, 0))      # resident
    bo_spec = pl.BlockSpec((1, D), lambda b, g: (0, 0))
    out_spec = pl.BlockSpec((BT, S, D), lambda b, g: (b, 0, 0))

    # Explicit scoped-VMEM budget (blocks are double-buffered by the pipeline),
    # clamped to stay below v7x's 64 MiB physical VMEM.
    cd = jnp.dtype(compute_dtype).itemsize
    od = jnp.dtype(hidden_states.dtype).itemsize
    est = (2 * BT * S * D * (cd + od)                        # x / out blocks
           + 2 * (D * 3 * GW * cd + 3 * GW * 4)              # wqkv / bqkv blocks
           + D * D * cd + D * 4                              # resident wo / bo
           + BT * S * D * cd                                 # ctx scratch
           + 2 * (BT * S * 3 * GW * 4                        # qkv f32
                  + 3 * BT * S * S * 4                       # dots / p
                  + BT * S * D * 4))                         # final f32 out
    vmem_limit = int(min(64 * 2 ** 20, max(32 * 2 ** 20, est)))

    return pl.pallas_call(
        kernel,
        out_shape=jax.ShapeDtypeStruct((B, S, D), hidden_states.dtype),
        grid_spec=pltpu.PrefetchScalarGridSpec(
            num_scalar_prefetch=0,
            grid=(B // BT, n_groups),
            in_specs=[x_spec, wqkv_spec, bqkv_spec, wo_spec, bo_spec],
            out_specs=out_spec,
            scratch_shapes=[pltpu.VMEM((BT * S, D), compute_dtype)],
        ),
        compiler_params=pltpu.CompilerParams(
            dimension_semantics=("parallel", "arbitrary"),
            vmem_limit_bytes=vmem_limit),
    )(x, wqkv, bqkv, wo, bo)


def _reference(hidden_states, params, n_heads):
    """Pure-JAX replica of the PyTorch forward (mask=None), for checking."""
    B, S, D = hidden_states.shape
    d_head = D // n_heads

    def lin(x, w, b):
        return x @ w + b

    q = lin(hidden_states, params["wq"], params["bq"])
    k = lin(hidden_states, params["wk"], params["bk"])
    v = lin(hidden_states, params["wv"], params["bv"])

    def heads(x):
        x = x.reshape(B, S, n_heads, d_head).transpose(0, 2, 1, 3)
        return x.reshape(B * n_heads, S, d_head)

    qh, kh, vh = heads(q), heads(k), heads(v)
    dots = jnp.einsum("bqd,bkd->bqk", qh, kh) / math.sqrt(d_head)
    lse = jax.scipy.special.logsumexp(dots, axis=-1, keepdims=True)
    p = jnp.exp(dots - lse)
    attn = jnp.einsum("bqk,bkd->bqd", p, vh)
    attn = attn.reshape(B, n_heads, S, d_head).transpose(0, 2, 1, 3).reshape(B, S, D)
    return lin(attn, params["wo"], params["bo"])


if __name__ == "__main__":
    B, S, D, n_heads = 2, 8, 32, 4

    key = jax.random.PRNGKey(0)
    keys = jax.random.split(key, 9)
    bound = 1.0 / math.sqrt(D)   # nn.Linear-style uniform init, deterministic

    params = {
        "wq": jax.random.uniform(keys[0], (D, D), jnp.float32, -bound, bound),
        "bq": jax.random.uniform(keys[1], (D,), jnp.float32, -bound, bound),
        "wk": jax.random.uniform(keys[2], (D, D), jnp.float32, -bound, bound),
        "bk": jax.random.uniform(keys[3], (D,), jnp.float32, -bound, bound),
        "wv": jax.random.uniform(keys[4], (D, D), jnp.float32, -bound, bound),
        "bv": jax.random.uniform(keys[5], (D,), jnp.float32, -bound, bound),
        "wo": jax.random.uniform(keys[6], (D, D), jnp.float32, -bound, bound),
        "bo": jax.random.uniform(keys[7], (D,), jnp.float32, -bound, bound),
    }
    hidden_states = jax.random.normal(keys[8], (B, S, D), jnp.float32)

    ref = _reference(hidden_states, params, n_heads)

    # f32 path, default tiling (all heads in one group, batch tile = 2).
    out = bert_self_attention(hidden_states, params, n_heads)
    out = jax.block_until_ready(out)
    assert out.shape == (B, S, D)
    assert jnp.allclose(out, ref, atol=1e-2, rtol=1e-2)

    # Exercise the multi-group + pl.when dispatch path (2 heads per group,
    # batch tile = 1 -> grid (2, 2)).
    out2 = bert_self_attention(hidden_states, params, n_heads,
                               heads_per_block=2, batch_tile=1)
    out2 = jax.block_until_ready(out2)
    assert jnp.allclose(out2, ref, atol=1e-2, rtol=1e-2)

    # bf16 path (bf16 MXU operands, f32 accumulation) — loose sanity check.
    params_bf16 = {k: (v.astype(jnp.bfloat16) if k.startswith("w") else v)
                   for k, v in params.items()}
    out_bf16 = bert_self_attention(hidden_states.astype(jnp.bfloat16),
                                   params_bf16, n_heads)
    out_bf16 = jax.block_until_ready(out_bf16)
    assert out_bf16.shape == (B, S, D)
    assert jnp.allclose(out_bf16.astype(jnp.float32), ref, atol=1e-1, rtol=1e-1)

    print("KERNEL_OK")
</pallas_src>

<mosaic_0001>
module attributes {stable_mosaic.version = 11 : i64} {
  func.func @kernel(%arg0: i32, %arg1: i32, %arg2: memref<2x8x32xf32, #tpu.memory_space<vmem>>, %arg3: memref<1x32x96xf32, #tpu.memory_space<vmem>>, %arg4: memref<1x1x96xf32, #tpu.memory_space<vmem>>, %arg5: memref<32x32xf32, #tpu.memory_space<vmem>>, %arg6: memref<1x32xf32, #tpu.memory_space<vmem>>, %arg7: memref<2x8x32xf32, #tpu.memory_space<vmem>>, %arg8: memref<16x32xf32, #tpu.memory_space<vmem>>) attributes {dimension_semantics = [#tpu.dimension_semantics<parallel>, #tpu.dimension_semantics<arbitrary>], iteration_bounds = array<i64: 1, 1>, scalar_prefetch = 0 : i64, scratch_operands = 1 : i64, tpu.core_type = #tpu.core_type<tc>, window_params = [{transform_indices = @transform_0, window_bounds = array<i64: 2, 8, 32>}, {transform_indices = @transform_1, window_bounds = array<i64: 1, 32, 96>}, {transform_indices = @transform_2, window_bounds = array<i64: 1, 1, 96>}, {pipeline_mode = #tpu.pipeline_mode<synchronous>, transform_indices = @transform_3, window_bounds = array<i64: 32, 32>}, {pipeline_mode = #tpu.pipeline_mode<synchronous>, transform_indices = @transform_4, window_bounds = array<i64: 1, 32>}, {transform_indices = @transform_5, window_bounds = array<i64: 2, 8, 32>}]} {
    %c0 = arith.constant 0 : index
    %c0_0 = arith.constant 0 : index
    %c0_1 = arith.constant 0 : index
    %0 = vector.load %arg2[%c0, %c0_0, %c0_1] : memref<2x8x32xf32, #tpu.memory_space<vmem>>, vector<2x8x32xf32>
    %1 = vector.shape_cast %0 : vector<2x8x32xf32> to vector<16x32xf32>
    %c0_2 = arith.constant 0 : index
    %c0_3 = arith.constant 0 : index
    %c0_4 = arith.constant 0 : index
    %2 = vector.load %arg3[%c0_2, %c0_3, %c0_4] : memref<1x32x96xf32, #tpu.memory_space<vmem>>, vector<1x32x96xf32>
    %3 = vector.shape_cast %2 : vector<1x32x96xf32> to vector<32x96xf32>
    %cst = arith.constant dense<0.000000e+00> : vector<16x96xf32>
    %4 = tpu.matmul %1, %3, %cst {dimension_numbers = #tpu.dot_dimension_numbers<[1], [0], [0], [1], [0, 0, 1, 1], [], []>} : vector<16x32xf32>, vector<32x96xf32>, vector<16x96xf32> -> vector<16x96xf32>
    %c0_5 = arith.constant 0 : index
    %c0_6 = arith.constant 0 : index
    %c0_7 = arith.constant 0 : index
    %5 = vector.load %arg4[%c0_5, %c0_6, %c0_7] : memref<1x1x96xf32, #tpu.memory_space<vmem>>, vector<1x1x96xf32>
    %6 = vector.shape_cast %5 : vector<1x1x96xf32> to vector<1x96xf32>
    %7 = vector.broadcast %6 : vector<1x96xf32> to vector<16x96xf32>
    %8 = arith.addf %4, %7 : vector<16x96xf32>
    %9 = vector.extract_strided_slice %8 {offsets = [0, 0], sizes = [16, 8], strides = [1, 1]} : vector<16x96xf32> to vector<16x8xf32>
    %10 = vector.shape_cast %9 : vector<16x8xf32> to vector<2x8x8xf32>
    %11 = vector.extract_strided_slice %8 {offsets = [0, 32], sizes = [16, 8], strides = [1, 1]} : vector<16x96xf32> to vector<16x8xf32>
    %12 = vector.shape_cast %11 : vector<16x8xf32> to vector<2x8x8xf32>
    %13 = vector.extract_strided_slice %8 {offsets = [0, 64], sizes = [16, 8], strides = [1, 1]} : vector<16x96xf32> to vector<16x8xf32>
    %14 = vector.shape_cast %13 : vector<16x8xf32> to vector<2x8x8xf32>
    "tpu.trace_start"() <{level = 10 : i32, message = "bqd,bkd->bqk"}> : () -> ()
    %cst_8 = arith.constant dense<0.000000e+00> : vector<2x8x8xf32>
    %15 = tpu.matmul %10, %12, %cst_8 {dimension_numbers = #tpu.dot_dimension_numbers<[2], [2], [1], [1], [0, 0, 0, 1, 1, 1], [0], [0]>} : vector<2x8x8xf32>, vector<2x8x8xf32>, vector<2x8x8xf32> -> vector<2x8x8xf32>
    "tpu.trace_stop"() : () -> ()
    %cst_9 = arith.constant dense<0xFF800000> : vector<2x8xf32>
    %16 = vector.multi_reduction <maximumf>, %15, %cst_9 [2] : vector<2x8x8xf32> to vector<2x8xf32>
    %17 = vector.shape_cast %16 : vector<2x8xf32> to vector<2x8x1xf32>
    %18 = vector.broadcast %17 : vector<2x8x1xf32> to vector<2x8x8xf32>
    %19 = arith.subf %15, %18 : vector<2x8x8xf32>
    %20 = math.exp %19 : vector<2x8x8xf32>
    %cst_10 = arith.constant dense<0.000000e+00> : vector<2x8xf32>
    %21 = vector.multi_reduction <add>, %20, %cst_10 [2] : vector<2x8x8xf32> to vector<2x8xf32>
    %22 = vector.shape_cast %21 : vector<2x8xf32> to vector<2x8x1xf32>
    "tpu.trace_start"() <{level = 10 : i32, message = "bqk,bkd->bqd"}> : () -> ()
    %cst_11 = arith.constant dense<0.000000e+00> : vector<2x8x8xf32>
    %23 = tpu.matmul %20, %14, %cst_11 {dimension_numbers = #tpu.dot_dimension_numbers<[2], [1], [1], [2], [0, 0, 0, 1, 1, 2], [0], [0]>} : vector<2x8x8xf32>, vector<2x8x8xf32>, vector<2x8x8xf32> -> vector<2x8x8xf32>
    "tpu.trace_stop"() : () -> ()
    %24 = tpu.reciprocal %22 : vector<2x8x1xf32> -> vector<2x8x1xf32>
    %25 = vector.broadcast %24 : vector<2x8x1xf32> to vector<2x8x8xf32>
    %26 = arith.mulf %23, %25 : vector<2x8x8xf32>
    %27 = vector.extract_strided_slice %8 {offsets = [0, 8], sizes = [16, 8], strides = [1, 1]} : vector<16x96xf32> to vector<16x8xf32>
    %28 = vector.shape_cast %27 : vector<16x8xf32> to vector<2x8x8xf32>
    %29 = vector.extract_strided_slice %8 {offsets = [0, 40], sizes = [16, 8], strides = [1, 1]} : vector<16x96xf32> to vector<16x8xf32>
    %30 = vector.shape_cast %29 : vector<16x8xf32> to vector<2x8x8xf32>
    %31 = vector.extract_strided_slice %8 {offsets = [0, 72], sizes = [16, 8], strides = [1, 1]} : vector<16x96xf32> to vector<16x8xf32>
    %32 = vector.shape_cast %31 : vector<16x8xf32> to vector<2x8x8xf32>
    "tpu.trace_start"() <{level = 10 : i32, message = "bqd,bkd->bqk"}> : () -> ()
    %cst_12 = arith.constant dense<0.000000e+00> : vector<2x8x8xf32>
    %33 = tpu.matmul %28, %30, %cst_12 {dimension_numbers = #tpu.dot_dimension_numbers<[2], [2], [1], [1], [0, 0, 0, 1, 1, 1], [0], [0]>} : vector<2x8x8xf32>, vector<2x8x8xf32>, vector<2x8x8xf32> -> vector<2x8x8xf32>
    "tpu.trace_stop"() : () -> ()
    %cst_13 = arith.constant dense<0xFF800000> : vector<2x8xf32>
    %34 = vector.multi_reduction <maximumf>, %33, %cst_13 [2] : vector<2x8x8xf32> to vector<2x8xf32>
    %35 = vector.shape_cast %34 : vector<2x8xf32> to vector<2x8x1xf32>
    %36 = vector.broadcast %35 : vector<2x8x1xf32> to vector<2x8x8xf32>
    %37 = arith.subf %33, %36 : vector<2x8x8xf32>
    %38 = math.exp %37 : vector<2x8x8xf32>
    %cst_14 = arith.constant dense<0.000000e+00> : vector<2x8xf32>
    %39 = vector.multi_reduction <add>, %38, %cst_14 [2] : vector<2x8x8xf32> to vector<2x8xf32>
    %40 = vector.shape_cast %39 : vector<2x8xf32> to vector<2x8x1xf32>
    "tpu.trace_start"() <{level = 10 : i32, message = "bqk,bkd->bqd"}> : () -> ()
    %cst_15 = arith.constant dense<0.000000e+00> : vector<2x8x8xf32>
    %41 = tpu.matmul %38, %32, %cst_15 {dimension_numbers = #tpu.dot_dimension_numbers<[2], [1], [1], [2], [0, 0, 0, 1, 1, 2], [0], [0]>} : vector<2x8x8xf32>, vector<2x8x8xf32>, vector<2x8x8xf32> -> vector<2x8x8xf32>
    "tpu.trace_stop"() : () -> ()
    %42 = tpu.reciprocal %40 : vector<2x8x1xf32> -> vector<2x8x1xf32>
    %43 = vector.broadcast %42 : vector<2x8x1xf32> to vector<2x8x8xf32>
    %44 = arith.mulf %41, %43 : vector<2x8x8xf32>
    %45 = vector.extract_strided_slice %8 {offsets = [0, 16], sizes = [16, 8], strides = [1, 1]} : vector<16x96xf32> to vector<16x8xf32>
    %46 = vector.shape_cast %45 : vector<16x8xf32> to vector<2x8x8xf32>
    %47 = vector.extract_strided_slice %8 {offsets = [0, 48], sizes = [16, 8], strides = [1, 1]} : vector<16x96xf32> to vector<16x8xf32>
    %48 = vector.shape_cast %47 : vector<16x8xf32> to vector<2x8x8xf32>
    %49 = vector.extract_strided_slice %8 {offsets = [0, 80], sizes = [16, 8], strides = [1, 1]} : vector<16x96xf32> to vector<16x8xf32>
    %50 = vector.shape_cast %49 : vector<16x8xf32> to vector<2x8x8xf32>
    "tpu.trace_start"() <{level = 10 : i32, message = "bqd,bkd->bqk"}> : () -> ()
    %cst_16 = arith.constant dense<0.000000e+00> : vector<2x8x8xf32>
    %51 = tpu.matmul %46, %48, %cst_16 {dimension_numbers = #tpu.dot_dimension_numbers<[2], [2], [1], [1], [0, 0, 0, 1, 1, 1], [0], [0]>} : vector<2x8x8xf32>, vector<2x8x8xf32>, vector<2x8x8xf32> -> vector<2x8x8xf32>
    "tpu.trace_stop"() : () -> ()
    %cst_17 = arith.constant dense<0xFF800000> : vector<2x8xf32>
    %52 = vector.multi_reduction <maximumf>, %51, %cst_17 [2] : vector<2x8x8xf32> to vector<2x8xf32>
    %53 = vector.shape_cast %52 : vector<2x8xf32> to vector<2x8x1xf32>
    %54 = vector.broadcast %53 : vector<2x8x1xf32> to vector<2x8x8xf32>
    %55 = arith.subf %51, %54 : vector<2x8x8xf32>
    %56 = math.exp %55 : vector<2x8x8xf32>
    %cst_18 = arith.constant dense<0.000000e+00> : vector<2x8xf32>
    %57 = vector.multi_reduction <add>, %56, %cst_18 [2] : vector<2x8x8xf32> to vector<2x8xf32>
    %58 = vector.shape_cast %57 : vector<2x8xf32> to vector<2x8x1xf32>
    "tpu.trace_start"() <{level = 10 : i32, message = "bqk,bkd->bqd"}> : () -> ()
    %cst_19 = arith.constant dense<0.000000e+00> : vector<2x8x8xf32>
    %59 = tpu.matmul %56, %50, %cst_19 {dimension_numbers = #tpu.dot_dimension_numbers<[2], [1], [1], [2], [0, 0, 0, 1, 1, 2], [0], [0]>} : vector<2x8x8xf32>, vector<2x8x8xf32>, vector<2x8x8xf32> -> vector<2x8x8xf32>
    "tpu.trace_stop"() : () -> ()
    %60 = tpu.reciprocal %58 : vector<2x8x1xf32> -> vector<2x8x1xf32>
    %61 = vector.broadcast %60 : vector<2x8x1xf32> to vector<2x8x8xf32>
    %62 = arith.mulf %59, %61 : vector<2x8x8xf32>
    %63 = vector.extract_strided_slice %8 {offsets = [0, 24], sizes = [16, 8], strides = [1, 1]} : vector<16x96xf32> to vector<16x8xf32>
    %64 = vector.shape_cast %63 : vector<16x8xf32> to vector<2x8x8xf32>
    %65 = vector.extract_strided_slice %8 {offsets = [0, 56], sizes = [16, 8], strides = [1, 1]} : vector<16x96xf32> to vector<16x8xf32>
    %66 = vector.shape_cast %65 : vector<16x8xf32> to vector<2x8x8xf32>
    %67 = vector.extract_strided_slice %8 {offsets = [0, 88], sizes = [16, 8], strides = [1, 1]} : vector<16x96xf32> to vector<16x8xf32>
    %68 = vector.shape_cast %67 : vector<16x8xf32> to vector<2x8x8xf32>
    "tpu.trace_start"() <{level = 10 : i32, message = "bqd,bkd->bqk"}> : () -> ()
    %cst_20 = arith.constant dense<0.000000e+00> : vector<2x8x8xf32>
    %69 = tpu.matmul %64, %66, %cst_20 {dimension_numbers = #tpu.dot_dimension_numbers<[2], [2], [1], [1], [0, 0, 0, 1, 1, 1], [0], [0]>} : vector<2x8x8xf32>, vector<2x8x8xf32>, vector<2x8x8xf32> -> vector<2x8x8xf32>
    "tpu.trace_stop"() : () -> ()
    %cst_21 = arith.constant dense<0xFF800000> : vector<2x8xf32>
    %70 = vector.multi_reduction <maximumf>, %69, %cst_21 [2] : vector<2x8x8xf32> to vector<2x8xf32>
    %71 = vector.shape_cast %70 : vector<2x8xf32> to vector<2x8x1xf32>
    %72 = vector.broadcast %71 : vector<2x8x1xf32> to vector<2x8x8xf32>
    %73 = arith.subf %69, %72 : vector<2x8x8xf32>
    %74 = math.exp %73 : vector<2x8x8xf32>
    %cst_22 = arith.constant dense<0.000000e+00> : vector<2x8xf32>
    %75 = vector.multi_reduction <add>, %74, %cst_22 [2] : vector<2x8x8xf32> to vector<2x8xf32>
    %76 = vector.shape_cast %75 : vector<2x8xf32> to vector<2x8x1xf32>
    "tpu.trace_start"() <{level = 10 : i32, message = "bqk,bkd->bqd"}> : () -> ()
    %cst_23 = arith.constant dense<0.000000e+00> : vector<2x8x8xf32>
    %77 = tpu.matmul %74, %68, %cst_23 {dimension_numbers = #tpu.dot_dimension_numbers<[2], [1], [1], [2], [0, 0, 0, 1, 1, 2], [0], [0]>} : vector<2x8x8xf32>, vector<2x8x8xf32>, vector<2x8x8xf32> -> vector<2x8x8xf32>
    "tpu.trace_stop"() : () -> ()
    %78 = tpu.reciprocal %76 : vector<2x8x1xf32> -> vector<2x8x1xf32>
    %79 = vector.broadcast %78 : vector<2x8x1xf32> to vector<2x8x8xf32>
    %80 = arith.mulf %77, %79 : vector<2x8x8xf32>
    %81 = tpu.concatenate %26, %44, %62, %80 in 2 : vector<2x8x8xf32>, vector<2x8x8xf32>, vector<2x8x8xf32>, vector<2x8x8xf32> -> vector<2x8x32xf32>
    %82 = vector.shape_cast %81 : vector<2x8x32xf32> to vector<16x32xf32>
    %c0_i32 = arith.constant 0 : i32
    %83 = arith.cmpi eq, %arg1, %c0_i32 : i32
    %84 = arith.extui %83 : i1 to i32
    %c0_i32_24 = arith.constant 0 : i32
    %85 = arith.cmpi ne, %84, %c0_i32_24 : i32
    scf.if %85 {
      %c0_27 = arith.constant 0 : index
      %c0_28 = arith.constant 0 : index
      %89 = vector.load %arg8[%c0_27, %c0_28] : memref<16x32xf32, #tpu.memory_space<vmem>>, vector<16x32xf32>
      tpu.vector_store %arg8[%c0_27, %c0_28], %82 {strides = array<i32>} : memref<16x32xf32, #tpu.memory_space<vmem>>, vector<16x32xf32>,
    } else {
    }
    %c0_i32_25 = arith.constant 0 : i32
    %86 = arith.cmpi eq, %arg1, %c0_i32_25 : i32
    %87 = arith.extui %86 : i1 to i32
    %c0_i32_26 = arith.constant 0 : i32
    %88 = arith.cmpi ne, %87, %c0_i32_26 : i32
    scf.if %88 {
      %c0_27 = arith.constant 0 : index
      %c0_28 = arith.constant 0 : index
      %89 = vector.load %arg8[%c0_27, %c0_28] : memref<16x32xf32, #tpu.memory_space<vmem>>, vector<16x32xf32>
      %c0_29 = arith.constant 0 : index
      %c0_30 = arith.constant 0 : index
      %90 = vector.load %arg5[%c0_29, %c0_30] : memref<32x32xf32, #tpu.memory_space<vmem>>, vector<32x32xf32>
      %cst_31 = arith.constant dense<0.000000e+00> : vector<16x32xf32>
      %91 = tpu.matmul %89, %90, %cst_31 {dimension_numbers = #tpu.dot_dimension_numbers<[1], [0], [0], [1], [0, 0, 1, 1], [], []>} : vector<16x32xf32>, vector<32x32xf32>, vector<16x32xf32> -> vector<16x32xf32>
      %c0_32 = arith.constant 0 : index
      %c0_33 = arith.constant 0 : index
      %92 = vector.load %arg6[%c0_32, %c0_33] : memref<1x32xf32, #tpu.memory_space<vmem>>, vector<1x32xf32>
      %93 = vector.broadcast %92 : vector<1x32xf32> to vector<16x32xf32>
      %94 = arith.addf %91, %93 : vector<16x32xf32>
      %95 = vector.shape_cast %94 : vector<16x32xf32> to vector<2x8x32xf32>
      %c0_34 = arith.constant 0 : index
      %c0_35 = arith.constant 0 : index
      %c0_36 = arith.constant 0 : index
      %96 = vector.load %arg7[%c0_34, %c0_35, %c0_36] : memref<2x8x32xf32, #tpu.memory_space<vmem>>, vector<2x8x32xf32>
      tpu.vector_store %arg7[%c0_34, %c0_35, %c0_36], %95 {strides = array<i32>} : memref<2x8x32xf32, #tpu.memory_space<vmem>>, vector<2x8x32xf32>,
    } else {
    }
    return
  }
  func.func @transform_0(%arg0: i32, %arg1: i32) -> (i32, i32, i32) {
    %c0_i32 = arith.constant 0 : i32
    %c0_i32_0 = arith.constant 0 : i32
    %c0_i32_1 = arith.constant 0 : i32
    return %arg0, %c0_i32, %c0_i32_0 : i32, i32, i32
  }
  func.func @transform_1(%arg0: i32, %arg1: i32) -> (i32, i32, i32) {
    %c0_i32 = arith.constant 0 : i32
    %c0_i32_0 = arith.constant 0 : i32
    %c0_i32_1 = arith.constant 0 : i32
    return %arg1, %c0_i32, %c0_i32_0 : i32, i32, i32
  }
  func.func @transform_2(%arg0: i32, %arg1: i32) -> (i32, i32, i32) {
    %c0_i32 = arith.constant 0 : i32
    %c0_i32_0 = arith.constant 0 : i32
    %c0_i32_1 = arith.constant 0 : i32
    return %arg1, %c0_i32, %c0_i32_0 : i32, i32, i32
  }
  func.func @transform_3(%arg0: i32, %arg1: i32) -> (i32, i32) {
    %c0_i32 = arith.constant 0 : i32
    %c0_i32_0 = arith.constant 0 : i32
    %c0_i32_1 = arith.constant 0 : i32
    return %c0_i32, %c0_i32_0 : i32, i32
  }
  func.func @transform_4(%arg0: i32, %arg1: i32) -> (i32, i32) {
    %c0_i32 = arith.constant 0 : i32
    %c0_i32_0 = arith.constant 0 : i32
    %c0_i32_1 = arith.constant 0 : i32
    return %c0_i32, %c0_i32_0 : i32, i32
  }
  func.func @transform_5(%arg0: i32, %arg1: i32) -> (i32, i32, i32) {
    %c0_i32 = arith.constant 0 : i32
    %c0_i32_0 = arith.constant 0 : i32
    %c0_i32_1 = arith.constant 0 : i32
    return %arg0, %c0_i32, %c0_i32_0 : i32, i32, i32
  }
}

</mosaic_0001>

<bundles_post_ra>
// kernel: tpu_custom_call.1
= control target key start
LH: loop header
LB: loop body
LE: loop exit
PB: predicated region body
PF: predicated region fallthrough
CT: control target
= control target key end

     0   :  { %10 = vsyncpa [#allocation4], 0  ;;  %s2262_s0 = inlined_call_operand.hbm [shape: f32[2,8,32], index: 0, kind: input, shape index: {}]   ;;  %s2263_s1 = inlined_call_operand.hbm [shape: f32[1,32,96], index: 1, kind: input, shape index: {}]   ;;  %s2264_s2 = inlined_call_operand.vmem [shape: f32[1,1,96], index: 2, kind: input, shape index: {}]   ;;  %s2265_s3 = inlined_call_operand.hbm [shape: f32[32,32], index: 3, kind: input, shape index: {}]   ;;  %s2266_s4 = inlined_call_operand.vmem [shape: f32[1,32], index: 4, kind: input, shape index: {}]   ;;  %s2267_s5 = inlined_call_operand.hbm [shape: f32[2,8,32], index: 5, kind: output, shape index: {}]  }
   0x1   :  { %11 = vsyncpa [#allocation7], 0 }
   0x2   :  { %12 = vsyncpa [#allocation5], 0  ;;  %s1967_s18 = smov [#allocation6]   ;;  %s1968_s20 = smov [#allocation3]  }
   0x3   :  { %s30_s19 = sshll.u32 %s1967_s18, 4  ;;  %s18_s21 = sshll.u32 %s1968_s20, 4  ;;  %s31_s19 = int_to_ptr.vmem [resolvable:$true] %s30_s19  ;;  %s2018_s21 = int_to_ptr.vmem [resolvable:$true] %s18_s21 }
   0x4   :  { %s1873_s24 = scalar_lea.hbm %s2263_s1, 512 }
   0x5   :  { %p1874_p0 = scmp.ne.s32.totalorder %s2263_s1, %s1873_s24  ;;  %p1877_p1 = scmp.lt.u32.totalorder %s1873_s24, %s2263_s1 }
   0x7   :  { %p1879_p2 = pnand %p1877_p1, %p1874_p0 }
   0x9   :  { %1882 = shalt.err (!%p1879_p2)
}
   0xa   :  { %s1883_s29 = scalar_lea.vmem %s31_s19, 512  ;;  %p1888_p4 = scmp.lt.s32.totalorder %s31_s19, %s31_s19 }
   0xb   :  { %p1884_p3 = scmp.ne.s32.totalorder %s31_s19, %s1883_s29  ;;  %p1889_p5 = scmp.lt.s32.totalorder %s1883_s29, %s1883_s29 }
   0xd   :  { %p1890_p6 = por %p1889_p5, %p1888_p4 }
   0xf   :  { %p1891_p7 = pnand %p1890_p6, %p1884_p3 }
  0x11   :  { %1894 = shalt.err (!%p1891_p7)
}
  0x12   :  { %s1969_s30 = smov 128   ;;  %s1970_s6 = smov 8  }
  0x13   :  { %36 = dma.hbm_to_vmem [thread:$0]  %s2263_s1, 512, %s31_s19, [#allocation7], %s1969_s30, %s1969_s30, %s1970_s6  }
  0x14   :  { %s1895_s11 = scalar_lea.hbm %s2262_s0, 256 }
  0x15   :  { %p1896_p8 = scmp.ne.s32.totalorder %s2262_s0, %s1895_s11  ;;  %p1899_p9 = scmp.lt.u32.totalorder %s1895_s11, %s2262_s0 }
  0x17   :  { %p1901_p10 = pnand %p1899_p9, %p1896_p8 }
  0x19   :  { %1904 = shalt.err (!%p1901_p10)
}
  0x1a   :  { %s1905_s16 = scalar_lea.vmem %s2018_s21, 256  ;;  %p1910_p12 = scmp.lt.s32.totalorder %s2018_s21, %s2018_s21 }
  0x1b   :  { %p1906_p11 = scmp.ne.s32.totalorder %s2018_s21, %s1905_s16  ;;  %p1911_p13 = scmp.lt.s32.totalorder %s1905_s16, %s1905_s16 }
  0x1d   :  { %p1912_p0 = por %p1911_p13, %p1910_p12 }
  0x1f   :  { %p1913_p1 = pnand %p1912_p0, %p1906_p11 }
  0x21   :  { %1916 = shalt.err (!%p1913_p1)
}
  0x22   :  { %24 = dma.hbm_to_vmem [thread:$0]  %s2262_s0, 256, %s2018_s21, [#allocation4], %s1969_s30, %s1969_s30, %s1970_s6  }
  0x23   :  { %s1971_s18 = smov [#allocation8]   ;;  %s1917_s23 = scalar_lea.hbm %s2265_s3, 512 }
  0x24   :  { %s44_s19 = sshll.u32 %s1971_s18, 4  ;;  %p1918_p2 = scmp.ne.s32.totalorder %s2265_s3, %s1917_s23  ;;  %s45_s19 = int_to_ptr.vmem [resolvable:$true] %s44_s19 }
  0x25   :  { %p1921_p3 = scmp.lt.u32.totalorder %s1917_s23, %s2265_s3 }
  0x27   :  { %p1923_p4 = pnand %p1921_p3, %p1918_p2 }
  0x29   :  { %1926 = shalt.err (!%p1923_p4)
}
  0x2a   :  { %s1927_s28 = scalar_lea.vmem %s45_s19, 512  ;;  %p1932_p6 = scmp.lt.s32.totalorder %s45_s19, %s45_s19 }
  0x2b   :  { %p1928_p5 = scmp.ne.s32.totalorder %s45_s19, %s1927_s28  ;;  %p1933_p7 = scmp.lt.s32.totalorder %s1927_s28, %s1927_s28 }
  0x2d   :  { %p1934_p8 = por %p1933_p7, %p1932_p6 }
  0x2f   :  { %p1935_p9 = pnand %p1934_p8, %p1928_p5 }
  0x31   :  { %1938 = shalt.err (!%p1935_p9)
}
  0x32   :  { %50 = dma.hbm_to_vmem [thread:$0]  %s2265_s3, 512, %s45_s19, [#allocation7], %s1969_s30, %s1969_s30, %s1970_s6  }
  0x33   :  { %1961 = dma.done.wait [#allocation4], 256  }
  0x34   :  { %1962 = vsyncadd [#allocation4], 4294967040 }
  0x35   :  { %1963 = dma.done.wait [#allocation7], 1024  }
  0x36   :  { %1964 = vsyncadd [#allocation7], 4294966272  ;;  %vm75_vm0 = vcmask 261120   ;;  %v64_v0 = vld [vmem:[#allocation6] sm:$0xff]  ;;  %v65_v1 = vld [vmem:[#allocation6 + $0x8] sm:$0xff]  ;;  %v1972_v8 = vmov 0.0  }
  0x37   :  { %v66_v2 = vld [vmem:[#allocation6 + $0x10] sm:$0xff]  ;;  %v1804_v3 = vpack.c.bf16 %v65_v1, %v64_v0  ;;  %v67_v4 = vld [vmem:[#allocation6 + $0x18] sm:$0xff]  ;;  %1713 = vmatprep.subr.mxu1 %v1972_v8  ;;  %vm1973_vm1 = vmmov 0   ;;  %v1628_v9 = vld [vmem:[%s2264_s2] ss:$0 sm:$0xff]  ;;  %s1974_s7 = smov 96  }
  0x38   :  { %v62_v5 = vld [vmem:[#allocation3] sm:$0xff]  ;;  %v1808_v6 = vpack.c.bf16 %v67_v4, %v66_v2  ;;  %v63_v7 = vld [vmem:[#allocation3 + $0x8] sm:$0xff]  ;;  %1715 = vmatprep.mubr.msk.f32.mxu1 %vm1973_vm1, %v1972_v8  ;;  %s1975_s8 = smov 64   ;;  %s1976_s9 = smov 88   ;;  %vm160_vm2 = vcmask 64512   ;;  %vm1505_vm3 = vcmask 195584  }
  0x39   :  { %1710 = vmatprep.mubr.msk.f32.mxu0 %vm75_vm0, %v62_v5  ;;  %1805 = vmatprep.subr.bf16.mxu0 %v1804_v3  ;;  %s1977_s2 = smov 120   ;;  %s1978_s10 = smov 56   ;;  %vm1502_vm4 = vcmask 130048  }
  0x3a   :  { %1807 = vmatpush3.bf16.msra.mxu0 %v1804_v3  ;;  %s1979_s11 = smov 80   ;;  %s1980_s12 = smov 112  }
  0x3b   :  { %1809 = vmatprep.subr.bf16.mxu0 %v1808_v6  ;;  %s1981_s13 = smov 48   ;;  %s1982_s14 = smov 72  }
  0x3c   :  { %s1983_s15 = smov 104   ;;  %s1984_s16 = smov 40  }
  0x3d   :  { %s1985_s1 = smov 16   ;;  %s1986_s17 = smov 24  }
  0x3e   :  { %1811 = vmatpush3.bf16.msra.mxu0 %v1808_v6  ;;  %s1987_s20 = smov [#allocation9]  }
  0x3f   :  { %1733 = vmatprep.subr.mxu0 %v1972_v8  ;;  %s1615_s22 = sshll.u32 %s1987_s20, 4  ;;  %s1616_s22 = int_to_ptr.vmem [resolvable:$true] %s1615_s22 }
  0x40   :  { %s1939_s23 = scalar_lea.vmem %s1616_s22, 256  ;;  %p1944_p11 = scmp.lt.s32.totalorder %s1616_s22, %s1616_s22 }
  0x41   :  { %1711 = vmatmul.mubr.msk.f32.vlgmr.msra.gmra.mrb[0].mxu0 %vm75_vm0, %v63_v7  ;;  %p1940_p10 = scmp.ne.s32.totalorder %s1616_s22, %s1939_s23  ;;  %p1945_p12 = scmp.lt.s32.totalorder %s1939_s23, %s1939_s23 }
  0x42   :  { %1735 = vmatprep.mubr.msk.f32.mxu0 %vm1973_vm1, %v1972_v8 }
  0x43   :  { %p1946_p13 = por %p1945_p12, %p1944_p11 }
  0x45   :  { %p1947_p0 = pnand %p1946_p13, %p1940_p10 }
 0x114   :  { %v1712_v10 = vpop.f32.mrb[0].mxu0 }
 0x115   :  { %v148_v11 = vpop.f32.mrb[1].mxu0  ;;  %v2084_v13 = vadd.f32 %v1712_v10, %v1628_v9 }
 0x116   :  { %v2081_v12 = vadd.f32 %v1628_v9, %v148_v11 }
 0x118   :  { %158 = vrot.lane.b32.xlu0 %v2081_v12, %s1974_s7 }
 0x11c   :  { %236 = vrot.lane.b32.xlu0 %v2084_v13, %s1974_s7 }
 0x120   :  { %330 = vrot.lane.b32.xlu0 %v2081_v12, %s1975_s8 }
 0x124   :  { %488 = vrot.lane.b32.xlu0 %v2081_v12, %s1976_s9 }
 0x128   :  { %566 = vrot.lane.b32.xlu0 %v2084_v13, %s1976_s9 }
 0x12c   :  { %486 = vrot.lane.b32.xlu0 %v2081_v12, %s1977_s2 }
 0x130   :  { %564 = vrot.lane.b32.xlu0 %v2084_v13, %s1977_s2 }
 0x134   :  { %660 = vrot.lane.b32.xlu0 %v2081_v12, %s1978_s10 }
 0x18a   :  { %v159_v14 = vpop.permute.xlu0 %158 }
 0x18b   :  { %1714 = vmatpush3.xpose.msk.msra.mxu1 %vm160_vm2, %v159_v14 }
 0x18c   :  { %1718 = vmatprep.subr.mxu1 %v1972_v8 }
 0x18e   :  { %1716 = vmatmul.mubr.msk.f32.vlgmr.msra.gmra.mrb[0].mxu1 %vm160_vm2, %v2081_v12  ;;  %v237_v15 = vpop.permute.xlu0 %236 }
 0x18f   :  { %1719 = vmatpush3.xpose.msk.msra.mxu1 %vm160_vm2, %v237_v15  ;;  %1720 = vmatprep.mubr.msk.f32.mxu1 %vm1973_vm1, %v1972_v8 }
 0x190   :  { %1723 = vmatprep.subr.mxu1 %v1972_v8 }
 0x192   :  { %1721 = vmatmul.mubr.msk.f32.vlgmr.msra.gmra.mrb[2].mxu1 %vm160_vm2, %v2084_v13  ;;  %v331_v16 = vpop.permute.xlu0 %330 }
 0x193   :  { %1724 = vmatpush3.msra.mxu1 %v331_v16  ;;  %1725 = vmatprep.mubr.msk.f32.mxu1 %vm1973_vm1, %v1972_v8 }
 0x194   :  { %1728 = vmatprep.subr.mxu1 %v1972_v8 }
 0x196   :  { %v489_v17 = vpop.permute.xlu0 %488 }
 0x197   :  { %1734 = vmatpush3.xpose.msk.msra.mxu0 %vm160_vm2, %v489_v17 }
 0x198   :  { %1743 = vmatprep.subr.mxu0 %v1972_v8 }
 0x19a   :  { %v567_v18 = vpop.permute.xlu0 %566 }
 0x19e   :  { %v487_v19 = vpop.permute.xlu0 %486 }
 0x19f   :  { %1736 = vmatmul.mubr.msk.f32.vlgmr.msra.gmra.mrb[2].mxu0 %vm160_vm2, %v487_v19 }
 0x1a0   :  { %1745 = vmatprep.mubr.msk.f32.mxu0 %vm1973_vm1, %v1972_v8 }
 0x1a2   :  { %v565_v20 = vpop.permute.xlu0 %564 }
 0x1a6   :  { %v661_v21 = vpop.permute.xlu0 %660 }
 0x1a7   :  { %1744 = vmatpush3.msra.mxu0 %v661_v21 }
 0x1a8   :  { %1753 = vmatprep.subr.mxu0 %v1972_v8 }
 0x261   :  { %v231_v22 = vpop.f32.mrb[0].mxu1 }
 0x262   :  { %v1717_v23 = vpop.f32.mrb[1].mxu1  ;;  %v312_v24 = vsel %vm160_vm2, %v231_v22, -inf }
 0x263   :  { %313 = vmax.xlane.f32.xlu1 %v312_v24 }
 0x265   :  { %v308_v25 = vpop.f32.mrb[2].mxu1 }
 0x266   :  { %v1722_v26 = vpop.f32.mrb[3].mxu1  ;;  %v315_v27 = vsel %vm160_vm2, %v308_v25, -inf }
 0x267   :  { %316 = vmax.xlane.f32.xlu1 %v315_v27 }
 0x272   :  { %v560_v28 = vpop.f32.mrb[2].mxu0 }
 0x273   :  { %v1737_v29 = vpop.f32.mrb[3].mxu0  ;;  %v642_v30 = vsel %vm160_vm2, %v560_v28, -inf }
 0x278   :  { %406 = vrot.lane.b32.xlu1 %v2084_v13, %s1975_s8 }
 0x29c   :  { %643 = vmax.xlane.f32.xlu1 %v642_v30 }
 0x2ad   :  { %736 = vrot.lane.b32.xlu1 %v2084_v13, %s1978_s10 }
 0x2b1   :  { %818 = vrot.lane.b32.xlu1 %v2081_v12, %s1979_s11 }
 0x2b5   :  { %816 = vrot.lane.b32.xlu1 %v2081_v12, %s1980_s12 }
 0x2f0   :  { %v314_v31 = vpop.xlane.xlu1 %313 }
 0x2f1   :  { %v318_v32 = vsub.f32 %v231_v22, %v314_v31 }
 0x2f3   :  { %v320_v33 = vmul.f32 1.442695, %v318_v32 }
 0x2f4   :  { %v317_v34 = vpop.xlane.xlu1 %316 }
 0x2f5   :  { %1841 = vpow2.f32 %v320_v33  ;;  %v319_v35 = vsub.f32 %v308_v25, %v317_v34 }
 0x2f7   :  { %v322_v36 = vmul.f32 1.442695, %v319_v35 }
 0x2f8   :  { %v407_v38 = vpop.permute.xlu1 %406 }
 0x2f9   :  { %1843 = vpow2.f32 %v322_v36 }
 0x2ff   :  { %v2125_v37 = vpop.eup %1841 }
 0x300   :  { %1726 = vmatmul.mubr.msk.f32.vlgmr.msra.gmra.mrb[4].mxu1 %vm160_vm2, %v2125_v37 }
 0x301   :  { %1729 = vmatpush3.msra.mxu1 %v407_v38  ;;  %1730 = vmatprep.mubr.msk.f32.mxu1 %vm1973_vm1, %v1972_v8 }
 0x302   :  { %1738 = vmatprep.subr.mxu1 %v1972_v8 }
 0x303   :  { %v2132_v39 = vpop.eup %1843 }
 0x304   :  { %1731 = vmatmul.mubr.msk.f32.vlgmr.msra.gmra.mrb[6].mxu1 %vm160_vm2, %v2132_v39 }
 0x305   :  { %1740 = vmatprep.mubr.msk.f32.mxu1 %vm1973_vm1, %v1972_v8 }
 0x308   :  { %1739 = vmatpush3.xpose.msk.msra.mxu1 %vm160_vm2, %v567_v18 }
 0x309   :  { %1748 = vmatprep.subr.mxu1 %v1972_v8 }
 0x30b   :  { %1741 = vmatmul.mubr.msk.f32.vlgmr.msra.gmra.mrb[8].mxu1 %vm160_vm2, %v565_v20 }
 0x30c   :  { %1750 = vmatprep.mubr.msk.f32.mxu1 %vm1973_vm1, %v1972_v8 }
 0x329   :  { %v644_v40 = vpop.xlane.xlu1 %643 }
 0x32a   :  { %v648_v41 = vsub.f32 %v560_v28, %v644_v40 }
 0x32c   :  { %v650_v42 = vmul.f32 1.442695, %v648_v41 }
 0x32d   :  { %v737_v43 = vpop.permute.xlu1 %736 }
 0x32e   :  { %1845 = vpow2.f32 %v650_v42  ;;  %1749 = vmatpush3.msra.mxu1 %v737_v43  ;;  %v324_v43 = vsel %vm160_vm2, %v2125_v37, 0.0 }
 0x32f   :  { %1758 = vmatprep.subr.mxu1 %v1972_v8 }
 0x331   :  { %v819_v44 = vpop.permute.xlu1 %818 }
 0x335   :  { %v817_v46 = vpop.permute.xlu1 %816 }
 0x338   :  { %v2144_v45 = vpop.eup %1845 }
 0x339   :  { %1746 = vmatmul.mubr.msk.f32.vlgmr.msra.gmra.mrb[4].mxu0 %vm160_vm2, %v2144_v45  ;;  %v654_v22 = vsel %vm160_vm2, %v2144_v45, 0.0 }
 0x33a   :  { %1754 = vmatpush3.xpose.msk.msra.mxu0 %vm160_vm2, %v819_v44  ;;  %1755 = vmatprep.mubr.msk.f32.mxu0 %vm1973_vm1, %v1972_v8 }
 0x33b   :  { %1763 = vmatprep.subr.mxu0 %v1972_v8 }
 0x33d   :  { %1756 = vmatmul.mubr.msk.f32.vlgmr.msra.gmra.mrb[6].mxu0 %vm160_vm2, %v817_v46 }
 0x33e   :  { %1765 = vmatprep.mubr.msk.f32.mxu0 %vm1973_vm1, %v1972_v8 }
 0x3d3   :  { %v2155_v47 = vpop.f32.mrb[4].mxu1 }
 0x3d4   :  { %v1727_v48 = vpop.f32.mrb[5].mxu1 }
 0x3d7   :  { %v2157_v49 = vpop.f32.mrb[6].mxu1 }
 0x3d8   :  { %v1732_v50 = vpop.f32.mrb[7].mxu1 }
 0x3de   :  { %v638_v51 = vpop.f32.mrb[8].mxu1 }
 0x3df   :  { %v1742_v52 = vpop.f32.mrb[9].mxu1  ;;  %v645_v53 = vsel %vm160_vm2, %v638_v51, -inf }
 0x3e0   :  { %646 = vmax.xlane.f32.xlu0 %v645_v53 }
 0x3f6   :  { %896 = vrot.lane.b32.xlu0 %v2084_v13, %s1979_s11 }
 0x3fa   :  { %894 = vrot.lane.b32.xlu0 %v2084_v13, %s1980_s12 }
 0x3fe   :  { %990 = vrot.lane.b32.xlu0 %v2081_v12, %s1981_s13 }
 0x40c   :  { %v2165_v54 = vpop.f32.mrb[4].mxu0 }
 0x40d   :  { %v1747_v55 = vpop.f32.mrb[5].mxu0 }
 0x410   :  { %v890_v56 = vpop.f32.mrb[6].mxu0 }
 0x411   :  { %v1757_v57 = vpop.f32.mrb[7].mxu0  ;;  %v972_v58 = vsel %vm160_vm2, %v890_v56, -inf }
 0x412   :  { %973 = vmax.xlane.f32.xlu1 %v972_v58 }
 0x423   :  { %1066 = vrot.lane.b32.xlu1 %v2084_v13, %s1981_s13 }
 0x427   :  { %1148 = vrot.lane.b32.xlu1 %v2081_v12, %s1982_s14 }
 0x42b   :  { %1146 = vrot.lane.b32.xlu1 %v2081_v12, %s1983_s15 }
 0x46d   :  { %v647_v59 = vpop.xlane.xlu0 %646 }
 0x46e   :  { %v649_v60 = vsub.f32 %v638_v51, %v647_v59 }
 0x470   :  { %v652_v61 = vmul.f32 1.442695, %v649_v60 }
 0x471   :  { %v897_v62 = vpop.permute.xlu0 %896 }
 0x472   :  { %1847 = vpow2.f32 %v652_v61 }
 0x475   :  { %v895_v63 = vpop.permute.xlu0 %894 }
 0x479   :  { %v991_v0 = vpop.permute.xlu0 %990 }
 0x47a   :  { %1764 = vmatpush3.msra.mxu0 %v991_v0 }
 0x47b   :  { %1773 = vmatprep.subr.mxu0 %v1972_v8 }
 0x47c   :  { %v2174_v1 = vpop.eup %1847 }
 0x47d   :  { %1751 = vmatmul.mubr.msk.f32.vlgmr.msra.gmra.mrb[10].mxu1 %vm160_vm2, %v2174_v1  ;;  %v657_v40 = vsel %vm160_vm2, %v2174_v1, 0.0  ;;  %v1516_v1 = vld [vmem:[#allocation8] sm:$0xff] }
 0x47e   :  { %1759 = vmatpush3.xpose.msk.msra.mxu1 %vm160_vm2, %v897_v62  ;;  %1760 = vmatprep.mubr.msk.f32.mxu1 %vm1973_vm1, %v1972_v8 }
 0x47f   :  { %1768 = vmatprep.subr.mxu1 %v1972_v8 }
 0x481   :  { %1761 = vmatmul.mubr.msk.f32.vlgmr.msra.gmra.mrb[12].mxu1 %vm160_vm2, %v895_v63 }
 0x482   :  { %1770 = vmatprep.mubr.msk.f32.mxu1 %vm1973_vm1, %v1972_v8 }
 0x49f   :  { %v974_v2 = vpop.xlane.xlu1 %973 }
 0x4a0   :  { %v978_v3 = vsub.f32 %v890_v56, %v974_v2  ;;  %v1517_v2 = vld [vmem:[#allocation8 + $0x8] sm:$0xff] }
 0x4a2   :  { %v980_v4 = vmul.f32 1.442695, %v978_v3 }
 0x4a3   :  { %v1067_v5 = vpop.permute.xlu1 %1066 }
 0x4a4   :  { %1849 = vpow2.f32 %v980_v4  ;;  %1769 = vmatpush3.msra.mxu1 %v1067_v5  ;;  %v1812_v4 = vpack.c.bf16 %v1517_v2, %v1516_v1 }
 0x4a5   :  { %1778 = vmatprep.subr.mxu1 %v1972_v8 }
 0x4a7   :  { %v1149_v6 = vpop.permute.xlu1 %1148 }
 0x4ab   :  { %v1147_v9 = vpop.permute.xlu1 %1146 }
 0x4ae   :  { %v1850_v7 = vpop.eup %1849 }
 0x4af   :  { %1766 = vmatmul.mubr.msk.f32.vlgmr.msra.gmra.mrb[8].mxu0 %vm160_vm2, %v1850_v7 }
 0x4b0   :  { %1774 = vmatpush3.xpose.msk.msra.mxu0 %vm160_vm2, %v1149_v6  ;;  %1775 = vmatprep.mubr.msk.f32.mxu0 %vm1973_vm1, %v1972_v8 }
 0x4b1   :  { %1783 = vmatprep.subr.mxu0 %v1972_v8 }
 0x4b3   :  { %1776 = vmatmul.mubr.msk.f32.vlgmr.msra.gmra.mrb[10].mxu0 %vm160_vm2, %v1147_v9  ;;  %v1519_v9 = vld [vmem:[#allocation8 + $0x18] sm:$0xff] }
 0x4b4   :  { %1785 = vmatprep.mubr.msk.f32.mxu0 %vm1973_vm1, %v1972_v8 }
 0x550   :  { %v2194_v10 = vpop.f32.mrb[10].mxu1 }
 0x551   :  { %v1752_v11 = vpop.f32.mrb[11].mxu1 }
 0x554   :  { %v968_v14 = vpop.f32.mrb[12].mxu1 }
 0x555   :  { %v1762_v15 = vpop.f32.mrb[13].mxu1  ;;  %v975_v16 = vsel %vm160_vm2, %v968_v14, -inf }
 0x556   :  { %976 = vmax.xlane.f32.xlu0 %v975_v16 }
 0x56c   :  { %1226 = vrot.lane.b32.xlu0 %v2084_v13, %s1982_s14 }
 0x570   :  { %1224 = vrot.lane.b32.xlu0 %v2084_v13, %s1983_s15 }
 0x582   :  { %v2201_v17 = vpop.f32.mrb[8].mxu0 }
 0x583   :  { %v1767_v18 = vpop.f32.mrb[9].mxu0 }
 0x586   :  { %v1220_v19 = vpop.f32.mrb[10].mxu0 }
 0x587   :  { %v1777_v20 = vpop.f32.mrb[11].mxu0  ;;  %v1302_v21 = vsel %vm160_vm2, %v1220_v19, -inf }
 0x588   :  { %1303 = vmax.xlane.f32.xlu1 %v1302_v21 }
 0x599   :  { %1396 = vrot.lane.b32.xlu1 %v2084_v13, %s1984_s16 }
 0x5bd   :  { %655 = vadd.xlane.f32.xlu1 %v654_v22 }
 0x5e3   :  { %v977_v23 = vpop.xlane.xlu0 %976 }
 0x5e4   :  { %v979_v24 = vsub.f32 %v968_v14, %v977_v23 }
 0x5e6   :  { %v982_v25 = vmul.f32 1.442695, %v979_v24 }
 0x5e7   :  { %v1227_v26 = vpop.permute.xlu0 %1226 }
 0x5e8   :  { %1851 = vpow2.f32 %v982_v25 }
 0x5eb   :  { %v1225_v13 = vpop.permute.xlu0 %1224 }
 0x5f2   :  { %v1852_v27 = vpop.eup %1851 }
 0x5f3   :  { %1771 = vmatmul.mubr.msk.f32.vlgmr.msra.gmra.mrb[14].mxu1 %vm160_vm2, %v1852_v27  ;;  %v987_v28 = vsel %vm160_vm2, %v1852_v27, 0.0 }
 0x5f4   :  { %1779 = vmatpush3.xpose.msk.msra.mxu1 %vm160_vm2, %v1227_v26  ;;  %988 = vadd.xlane.f32.xlu1 %v987_v28 }
 0x5f5   :  { %1780 = vmatprep.mubr.msk.f32.mxu1 %vm1973_vm1, %v1972_v8  ;;  %1788 = vmatprep.subr.mxu1 %v1972_v8 }
 0x5f7   :  { %1781 = vmatmul.mubr.msk.f32.vlgmr.msra.gmra.mrb[16].mxu1 %vm160_vm2, %v1225_v13 }
 0x5f8   :  { %1790 = vmatprep.mubr.msk.f32.mxu1 %vm1973_vm1, %v1972_v8  ;;  %v984_v8 = vsel %vm160_vm2, %v1850_v7, 0.0  ;;  %v1518_v7 = vld [vmem:[#allocation8 + $0x10] sm:$0xff] }
 0x615   :  { %v1304_v29 = vpop.xlane.xlu1 %1303 }
 0x616   :  { %v1308_v30 = vsub.f32 %v1220_v19, %v1304_v29 }
 0x618   :  { %v1310_v38 = vmul.f32 1.442695, %v1308_v30 }
 0x619   :  { %v1397_v31 = vpop.permute.xlu1 %1396 }
 0x61a   :  { %1789 = vmatpush3.msra.mxu1 %v1397_v31  ;;  %1853 = vpow2.f32 %v1310_v38 }
 0x624   :  { %v1854_v41 = vpop.eup %1853 }
 0x625   :  { %v1314_v42 = vsel %vm160_vm2, %v1854_v41, 0.0 }
 0x64a   :  { %v656_v44 = vpop.xlane.xlu1 %655 }
 0x64b   :  { %1855 = vrcp.f32 %v656_v44 }
 0x655   :  { %v1856_v45 = vpop.eup %1855 }
 0x656   :  { %v814_v46 = vmul.f32 %v1856_v45, %v2165_v54  ;;  %v327_v54 = vsel %vm160_vm2, %v2132_v39, 0.0 }
 0x6c6   :  { %v1138_v32 = vpop.f32.mrb[14].mxu1 }
 0x6c7   :  { %v1772_v33 = vpop.f32.mrb[15].mxu1 }
 0x6ca   :  { %v1298_v34 = vpop.f32.mrb[16].mxu1 }
 0x6cb   :  { %v1782_v35 = vpop.f32.mrb[17].mxu1  ;;  %v1305_v36 = vsel %vm160_vm2, %v1298_v34, -inf }
 0x6cc   :  { %1306 = vmax.xlane.f32.xlu0 %v1305_v36  ;;  %v1655_v35 = vld [vmem:[%s2266_s4] ss:$0 sm:$0xff] }
 0x6e2   :  { %1320 = vrot.lane.b32.xlu0 %v2081_v12, %s1984_s16  ;;  %v989_v12 = vpop.xlane.xlu1 %988 }
 0x6e3   :  { %1857 = vrcp.f32 %v989_v12 }
 0x6ed   :  { %v1858_v48 = vpop.eup %1857 }
 0x6ee   :  { %v1145_v50 = vmul.f32 %v1858_v48, %v1138_v32 }
 0x701   :  { %658 = vadd.xlane.f32.xlu0 %v657_v40 }
 0x705   :  { %985 = vadd.xlane.f32.xlu0 %v984_v8 }
 0x709   :  { %1315 = vadd.xlane.f32.xlu0 %v1314_v42 }
 0x70d   :  { %325 = vadd.xlane.f32.xlu0 %v324_v43 }
 0x723   :  { %1478 = vrot.lane.b32.xlu0 %v814_v46, %s1970_s6 }
 0x727   :  { %1488 = vrot.lane.b32.xlu0 %v1145_v50, %s1985_s1 }
 0x759   :  { %v1307_v51 = vpop.xlane.xlu0 %1306 }
 0x75a   :  { %v1309_v52 = vsub.f32 %v1298_v34, %v1307_v51 }
 0x75c   :  { %v1312_v53 = vmul.f32 1.442695, %v1309_v52 }
 0x75d   :  { %v1321_v55 = vpop.permute.xlu0 %1320 }
 0x75e   :  { %1859 = vpow2.f32 %v1312_v53  ;;  %1784 = vmatpush3.msra.mxu0 %v1321_v55 }
 0x75f   :  { %1786 = vmatmul.mubr.msk.f32.vlgmr.msra.gmra.mrb[12].mxu0 %vm160_vm2, %v1854_v41  ;;  %1813 = vmatprep.subr.bf16.mxu0 %v1812_v4 }
 0x760   :  { %1815 = vmatpush3.bf16.msra.mxu0 %v1812_v4 }
 0x768   :  { %v1860_v37 = vpop.eup %1859 }
 0x769   :  { %1791 = vmatmul.mubr.msk.f32.vlgmr.msra.gmra.mrb[18].mxu1 %vm160_vm2, %v1860_v37  ;;  %v1317_v56 = vsel %vm160_vm2, %v1860_v37, 0.0 }
 0x76a   :  { %1318 = vadd.xlane.f32.xlu1 %v1317_v56 }
 0x76e   :  { %328 = vadd.xlane.f32.xlu1 %v327_v54 }
 0x78e   :  { %v659_v57 = vpop.xlane.xlu0 %658 }
 0x78f   :  { %1861 = vrcp.f32 %v659_v57 }
 0x792   :  { %v986_v58 = vpop.xlane.xlu0 %985 }
 0x793   :  { %1863 = vrcp.f32 %v986_v58 }
 0x796   :  { %v1316_v63 = vpop.xlane.xlu0 %1315 }
 0x797   :  { %1865 = vrcp.f32 %v1316_v63 }
 0x799   :  { %v1862_v59 = vpop.eup %1861 }
 0x79a   :  { %v815_v60 = vmul.f32 %v1862_v59, %v2194_v10  ;;  %v1816_v10 = vpack.c.bf16 %v1519_v9, %v1518_v7 }
 0x79c   :  { %1480 = vrot.lane.b32.xlu1 %v815_v60, %s1970_s6  ;;  %1817 = vmatprep.subr.bf16.mxu0 %v1816_v10 }
 0x79d   :  { %v1864_v61 = vpop.eup %1863  ;;  %1819 = vmatpush3.bf16.msra.mxu0 %v1816_v10 }
 0x79e   :  { %v1144_v62 = vmul.f32 %v1864_v61, %v2201_v17  ;;  %v326_v17 = vpop.xlane.xlu0 %325 }
 0x7a0   :  { %1486 = vrot.lane.b32.xlu1 %v1144_v62, %s1985_s1 }
 0x7a1   :  { %v1866_v39 = vpop.eup %1865 }
 0x7a2   :  { %v1479_v23 = vpop.permute.xlu0 %1478 }
 0x7a6   :  { %v1489_v29 = vpop.permute.xlu0 %1488 }
 0x7f7   :  { %v1319_v0 = vpop.xlane.xlu1 %1318 }
 0x7f8   :  { %1867 = vrcp.f32 %v1319_v0 }
 0x7f9   :  { %1869 = vrcp.f32 %v326_v17 }
 0x7fb   :  { %v329_v18 = vpop.xlane.xlu1 %328 }
 0x7fc   :  { %1871 = vrcp.f32 %v329_v18 }
 0x802   :  { %v1868_v11 = vpop.eup %1867 }
 0x803   :  { %v1870_v20 = vpop.eup %1869 }
 0x804   :  { %v484_v21 = vmul.f32 %v1870_v20, %v2155_v47 }
 0x806   :  { %v1500_v24 = vsel %vm160_vm2, %v484_v21, %v1479_v23  ;;  %v1872_v28 = vpop.eup %1871 }
 0x807   :  { %v485_v13 = vmul.f32 %v1872_v28, %v2157_v49 }
 0x80e   :  { %v1481_v19 = vpop.permute.xlu1 %1480 }
 0x80f   :  { %v1501_v30 = vsel %vm160_vm2, %v485_v13, %v1481_v19 }
 0x810   :  { %v1504_v47 = vsel %vm1502_vm4, %v1501_v30, %v1489_v29 }
 0x812   :  { %v1487_v22 = vpop.permute.xlu1 %1486 }
 0x813   :  { %v1503_v25 = vsel %vm1502_vm4, %v1500_v24, %v1487_v22 }
 0x832   :  { %v1392_v3 = vpop.f32.mrb[12].mxu0 }
 0x833   :  { %v1474_v5 = vmul.f32 %v1866_v39, %v1392_v3  ;;  %v1787_v6 = vpop.f32.mrb[13].mxu0 }
 0x835   :  { %1494 = vrot.lane.b32.xlu1 %v1474_v5, %s1986_s17 }
 0x83c   :  { %v1468_v14 = vpop.f32.mrb[18].mxu1 }
 0x83d   :  { %v1475_v15 = vmul.f32 %v1868_v11, %v1468_v14  ;;  %v1792_v16 = vpop.f32.mrb[19].mxu1 }
 0x83f   :  { %1496 = vrot.lane.b32.xlu0 %v1475_v15, %s1986_s17 }
 0x8a7   :  { %v1495_v26 = vpop.permute.xlu1 %1494 }
 0x8a8   :  { %v1506_v27 = vsel %vm1505_vm3, %v1503_v25, %v1495_v26 }
 0x8a9   :  { %1512 = vst.msk [vmem:[#allocation2] sm:$0xff] %vm75_vm0, %v1506_v27 }
 0x8b0   :  { %v1514_v31 = vld [vmem:[#allocation2] sm:$0xff] }
 0x8b1   :  { %1801 = vmatprep.mubr.msk.f32.mxu0 %vm75_vm0, %v1514_v31  ;;  %v1497_v32 = vpop.permute.xlu0 %1496 }
 0x8b2   :  { %v1507_v33 = vsel %vm1505_vm3, %v1504_v47, %v1497_v32 }
 0x8b3   :  { %1513 = vst.msk [vmem:[#allocation2 + $0x8] sm:$0xff] %vm75_vm0, %v1507_v33 }
 0x8ba   :  { %v1515_v34 = vld [vmem:[#allocation2 + $0x8] sm:$0xff] }
 0x8bb   :  { %1802 = vmatmul.mubr.msk.f32.vlgmr.msra.gmra.mrb[14].mxu0 %vm75_vm0, %v1515_v34 }
 0x98e   :  { %v1803_v49 = vpop.f32.mrb[14].mxu0 }
 0x98f   :  { %v1605_v36 = vadd.f32 %v1803_v49, %v1655_v35  ;;  %v1599_v38 = vpop.f32.mrb[15].mxu0 }
 0x990   :  { %v1600_v40 = vadd.f32 %v1655_v35, %v1599_v38 }
 0x991   :  { %1609 = vst.msk [vmem:[#allocation9 + $0x8] sm:$0xff] %vm75_vm0, %v1605_v36 }
 0x992   :  { %1608 = vst.msk [vmem:[#allocation9] sm:$0xff] %vm75_vm0, %v1600_v40 }
 0x993   :  { %1950 = shalt.err (!%p1947_p0)
}
 0x994   :  { %s1951_s25 = scalar_lea.hbm %s2267_s5, 256 }
 0x995   :  { %p1952_p1 = scmp.ne.s32.totalorder %s2267_s5, %s1951_s25  ;;  %p1955_p2 = scmp.lt.u32.totalorder %s1951_s25, %s2267_s5 }
 0x997   :  { %p1957_p3 = pnand %p1955_p2, %p1952_p1 }
 0x999   :  { %1960 = shalt.err (!%p1957_p3)
}
 0x99a   :  { %1621 = dma.vmem_to_hbm [thread:$0]  %s1616_s22, 256, %s2267_s5, [#allocation5], %s1969_s30, %s1969_s30, %s1970_s6  }
 0x99b   :  { %1965 = dma.done.wait [#allocation5], 256  }
 0x99c   :  { %1966 = vsyncadd [#allocation5], 4294967040 }
 0x99d   :  { %1625 = vsyncpa [#allocation4], 1 }
 0x99e   :  { %1626 = vsyncpa [#allocation7], 1 }
 0x99f   :  { %1627 = vsyncpa [#allocation5], 1 }

</bundles_post_ra>
